<compile_context>
chip_gen: v7x
topology: tpu7x:2x2x1
jax: 0.10.0
libtpu: 0.0.40
codegen_flags: <defaults>
</compile_context>

<pallas_src>
import functools

import jax
import jax.numpy as jnp
from jax.experimental import pallas as pl
from jax.experimental.pallas import tpu as pltpu


def _round_up(v, m):
    return ((v + m - 1) // m) * m


def _sublane_multiple(dtype):
    # min sublane tile: f32 -> 8, bf16 -> 16, int8/fp8 -> 32
    return {4: 8, 2: 16, 1: 32}.get(jnp.dtype(dtype).itemsize, 8)


def _pick_tile(dim, unit, cap):
    """Return (tile, padded_dim).

    Prefers the whole (unit-rounded) dim when it fits under `cap`; otherwise the largest
    divisor of the rounded dim that is a multiple of `unit` and <= cap, so no padding is
    wasted; only if every divisor is tiny does it fall back to padding to a `cap` multiple.
    """
    padded = _round_up(dim, unit)
    if padded <= cap:
        return padded, padded
    best = unit
    n_units = padded // unit
    for f in range(1, n_units + 1):
        if n_units % f == 0 and f * unit <= cap:
            best = max(best, f * unit)
    if best >= max(unit, cap // 2):
        return best, padded
    return cap, _round_up(dim, cap)


def _vmem_capacity_bytes():
    try:
        return int(pltpu.get_tpu_info().vmem_capacity_bytes)
    except Exception:
        return 64 * 2 ** 20  # conservative: v7x per-TensorCore VMEM


# --------------------------------------------------------------------------------------
# Kernels
# --------------------------------------------------------------------------------------
def _made_fast_kernel(x_ref, w_ref, b_ref, prev_ref, maxc_ref, o_ref, *, last_layer):
    """Single-axis (batch-tile) grid: whole masked W resident in VMEM.

    The mask rebuild per batch tile is a single VPU select on a small tile and keeps the
    only grid axis "parallel" (both TensorCores on v7x).  W / bias / prev / maxc use
    constant index_maps so their HBM DMAs happen once.
    """
    prev = prev_ref[...]                                   # [K, 1] int32
    maxc = maxc_ref[...]                                   # [1, N] int32
    keep = (maxc > prev) if last_layer == 1 else (maxc >= prev)
    masked_w = jnp.where(keep, w_ref[...], jnp.zeros((), dtype=w_ref.dtype))
    acc = jnp.dot(x_ref[...], masked_w, preferred_element_type=jnp.float32)
    o_ref[...] = (acc + b_ref[...].astype(jnp.float32)).astype(o_ref.dtype)


def _made_tiled_kernel(x_ref, w_ref, b_ref, prev_ref, maxc_ref, o_ref, acc_ref,
                       *cache_refs, last_layer):
    """One (n, m, k) grid step of h = x @ (W * mask) + b.

    x_ref    [tm, tk]   activation tile
    w_ref    [tk, tn]   weight tile
    b_ref    [1,  tn]   bias tile
    prev_ref [tk, 1]    int32 previous-layer connectivity degrees
    maxc_ref [1,  tn]   int32 sampled max connections
    o_ref    [tm, tn]   output tile
    acc_ref  [tm, tn]   f32 accumulator (lives across the K loop)
    cache_refs: optional [num_k, tk, tn] VMEM cache of masked weights, built at m == 0
                (fed straight into the MXU, no store->reload) and reused for m > 0.
    """
    m_i = pl.program_id(1)
    k_i = pl.program_id(2)
    num_k = pl.num_programs(2)

    @pl.when(k_i == 0)
    def _init():
        acc_ref[...] = jnp.zeros_like(acc_ref)

    def _masked_weight_tile():
        keep = (maxc_ref[...] > prev_ref[...]) if last_layer == 1 \
            else (maxc_ref[...] >= prev_ref[...])
        return jnp.where(keep, w_ref[...], jnp.zeros((), dtype=w_ref.dtype))

    if cache_refs:                                         # amortize mask across batch tiles
        mw_cache = cache_refs[0]

        @pl.when(m_i == 0)
        def _build_and_use():
            mw = _masked_weight_tile()
            mw_cache[k_i] = mw                             # fill cache for later batch tiles
            acc_ref[...] += jnp.dot(x_ref[...], mw,
                                    preferred_element_type=jnp.float32)

        @pl.when(m_i > 0)
        def _reuse():
            acc_ref[...] += jnp.dot(x_ref[...], mw_cache[k_i],
                                    preferred_element_type=jnp.float32)
    else:
        acc_ref[...] += jnp.dot(x_ref[...], _masked_weight_tile(),
                                preferred_element_type=jnp.float32)

    @pl.when(k_i == num_k - 1)
    def _finalize():
        o_ref[...] = (acc_ref[...] + b_ref[...].astype(jnp.float32)).astype(o_ref.dtype)


# --------------------------------------------------------------------------------------
# Wrapper
# --------------------------------------------------------------------------------------
def made_forward(x, weights, bias, prev_connections, key, last_layer,
                 *, tm_cap=None, tk_cap=None, tn_cap=None,
                 cache_budget_bytes=None, fast_path_budget_bytes=None):
    """JAX/Pallas equivalent of MADE.forward(x, prev_connections).

    Returns (h_x, max_connections), matching the PyTorch module.
    `last_layer` must be a static Python int (selects '>' vs '>=' at trace time).
    """
    in_dim, out_dim = weights.shape
    batch = x.shape[0]
    last_layer = int(last_layer)

    # ---- host-side glue: sample max_connections (mirrors construct_mask) -----------
    # TODO(synk): torch uses uniform_(min(prev), out_dim).ceil(); boundary inclusion of
    # the lower end differs by measure-zero events only.
    low = jnp.min(prev_connections).astype(jnp.float32)
    u = jax.random.uniform(key, (out_dim,), minval=low, maxval=float(out_dim),
                           dtype=jnp.float32)
    max_connections = jnp.ceil(u)                          # integer-valued float tensor

    prev_i = jnp.round(prev_connections).astype(jnp.int32)  # exact int compares in-kernel
    maxc_i = max_connections.astype(jnp.int32)

    compute_dtype = weights.dtype                          # keep params' dtype (bf16 ok)
    if x.dtype != compute_dtype:
        x = x.astype(compute_dtype)
    out_dtype = compute_dtype

    itemsize = jnp.dtype(compute_dtype).itemsize
    out_itemsize = jnp.dtype(out_dtype).itemsize
    b_itemsize = jnp.dtype(bias.dtype).itemsize
    sublane = _sublane_multiple(compute_dtype)             # bf16 batch padding -> 16

    # ---- generation-aware budgets ---------------------------------------------------
    vmem_cap = _vmem_capacity_bytes()
    big_vmem = vmem_cap >= 96 * 2 ** 20                    # v5e/v6e (128 MiB) vs v7x (64 MiB)
    if tm_cap is None:
        tm_cap = 512 if big_vmem else 256
    if tk_cap is None:
        tk_cap = 1024 if big_vmem else 512
    if tn_cap is None:
        tn_cap = 1024 if big_vmem else 512
    if cache_budget_bytes is None:
        cache_budget_bytes = (24 if big_vmem else 8) * 2 ** 20
    if fast_path_budget_bytes is None:
        fast_path_budget_bytes = vmem_cap // 6

    # ---- fast-path decision: whole masked W resident, batch-only grid ---------------
    K_full = _round_up(in_dim, 128)
    N_full = _round_up(out_dim, 128)
    fast_tm, fast_M = _pick_tile(batch, sublane, 512)
    fast_working = (2 * K_full * N_full * itemsize          # W (double-buffered alloc)
                    + 2 * fast_tm * K_full * itemsize       # x tiles
                    + 2 * fast_tm * N_full * out_itemsize   # out tiles
                    + 2 * N_full * (b_itemsize + 4) + 2 * K_full * 4)
    use_fast = fast_working <= fast_path_budget_bytes

    if use_fast:
        tm, M = fast_tm, fast_M
        K, N = K_full, N_full
    else:
        tm, M = _pick_tile(batch, sublane, tm_cap)
        tk, K = _pick_tile(in_dim, 128, tk_cap)             # divisor tiles: no dead K/N rows
        tn, N = _pick_tile(out_dim, 128, tn_cap)

    # ---- lane/sublane-dense padding --------------------------------------------------
    x_p = jnp.pad(x, ((0, M - batch), (0, K - in_dim)))
    w_p = jnp.pad(weights, ((0, K - in_dim), (0, N - out_dim)))
    b_p = jnp.pad(bias, (0, N - out_dim)).reshape(1, N)
    prev_p = jnp.pad(prev_i, (0, K - in_dim)).reshape(K, 1)
    maxc_p = jnp.pad(maxc_i, (0, N - out_dim)).reshape(1, N)

    if use_fast:
        num_m = M // tm
        grid_spec = pltpu.PrefetchScalarGridSpec(
            num_scalar_prefetch=0,
            grid=(num_m,),
            in_specs=[
                pl.BlockSpec((tm, K), lambda m: (m, 0)),    # x
                pl.BlockSpec((K, N), lambda m: (0, 0)),     # W        (fetched once)
                pl.BlockSpec((1, N), lambda m: (0, 0)),     # bias     (fetched once)
                pl.BlockSpec((K, 1), lambda m: (0, 0)),     # prev     (fetched once)
                pl.BlockSpec((1, N), lambda m: (0, 0)),     # maxc     (fetched once)
            ],
            out_specs=pl.BlockSpec((tm, N), lambda m: (m, 0)),
        )
        kernel = functools.partial(_made_fast_kernel, last_layer=last_layer)
        dims = ("parallel",)
        est_vmem = fast_working
    else:
        num_m, num_k, num_n = M // tm, K // tk, N // tn

        cache_bytes = num_k * tk * tn * itemsize
        # Cache only when the batch axis has >1 tile AND the N axis still provides
        # megacore parallelism (num_n > 1); otherwise keep the m axis "parallel" and
        # just rebuild the cheap mask per tile.
        use_cache = (num_m > 1) and (num_n > 1) and (cache_bytes <= cache_budget_bytes)

        scratch_shapes = [pltpu.VMEM((tm, tn), jnp.float32)]
        if use_cache:
            scratch_shapes.append(pltpu.VMEM((num_k, tk, tn), compute_dtype))
            # For m > 0 the kernel reads the VMEM cache, so collapse W / prev block
            # indices to constants: Pallas elides consecutive duplicate fetches.
            w_map = lambda n, m, k: (jnp.where(m == 0, k, 0), n)
            prev_map = lambda n, m, k: (jnp.where(m == 0, k, 0), 0)
        else:
            w_map = lambda n, m, k: (k, n)
            prev_map = lambda n, m, k: (k, 0)

        grid_spec = pltpu.PrefetchScalarGridSpec(
            num_scalar_prefetch=0,
            grid=(num_n, num_m, num_k),                     # K innermost (reduction)
            in_specs=[
                pl.BlockSpec((tm, tk), lambda n, m, k: (m, k)),   # x
                pl.BlockSpec((tk, tn), w_map),                    # W
                pl.BlockSpec((1, tn), lambda n, m, k: (0, n)),    # bias
                pl.BlockSpec((tk, 1), prev_map),                  # prev_connections
                pl.BlockSpec((1, tn), lambda n, m, k: (0, n)),    # max_connections
            ],
            out_specs=pl.BlockSpec((tm, tn), lambda n, m, k: (m, n)),
            scratch_shapes=scratch_shapes,
        )
        kernel = functools.partial(_made_tiled_kernel, last_layer=last_layer)
        dims = ("parallel", "arbitrary" if use_cache else "parallel", "arbitrary")

        est_vmem = (2 * tm * tk * itemsize + 2 * tk * tn * itemsize
                    + 2 * tm * tn * out_itemsize + tm * tn * 4
                    + 2 * tn * (b_itemsize + 4) + 2 * tk * 4)
        if use_cache:
            est_vmem += cache_bytes

    vmem_limit = int(min(max(2 * est_vmem, 16 * 2 ** 20), int(0.6 * vmem_cap)))

    cost = pl.CostEstimate(
        flops=2 * M * K * N,
        transcendentals=0,
        bytes_accessed=(M * K + K * N) * itemsize + M * N * out_itemsize
                       + N * (b_itemsize + 4) + K * 4)

    h_p = pl.pallas_call(
        kernel,
        grid_spec=grid_spec,
        out_shape=jax.ShapeDtypeStruct((M, N), out_dtype),
        compiler_params=pltpu.CompilerParams(
            dimension_semantics=dims,
            vmem_limit_bytes=vmem_limit),
        cost_estimate=cost,
    )(x_p, w_p, b_p, prev_p, maxc_p)

    # TODO(synk): when stacking MADE layers back-to-back, fuse layers into a single
    # pallas_call (alias activation buffers) to amortize per-call launch/DMA cost.
    return h_p[:batch, :out_dim], max_connections


# --------------------------------------------------------------------------------------
# Reference & tests
# --------------------------------------------------------------------------------------
def _reference(x, weights, bias, prev_connections, max_connections, last_layer):
    prev_i = jnp.round(prev_connections).astype(jnp.int32)
    maxc_i = max_connections.astype(jnp.int32)
    if last_layer == 1:
        mask = maxc_i[None, :] > prev_i[:, None]
    else:
        mask = maxc_i[None, :] >= prev_i[:, None]
    w = weights.astype(jnp.float32) * mask.astype(jnp.float32)
    return x.astype(jnp.float32) @ w + bias.astype(jnp.float32)


def _make_case(seed, batch, in_dim, out_dim, dtype, prev_mod):
    k_w, k_b, k_x, k_mask = jax.random.split(jax.random.fold_in(jax.random.PRNGKey(0), seed), 4)
    weights = jax.random.normal(k_w, (in_dim, out_dim), dtype=jnp.float32).astype(dtype)
    bias = jax.random.normal(k_b, (out_dim,), dtype=jnp.float32)
    x = jax.random.normal(k_x, (batch, in_dim), dtype=jnp.float32).astype(dtype)
    prev = (jnp.arange(in_dim, dtype=jnp.float32) % float(prev_mod)) + 1.0
    return weights, bias, x, prev, k_mask


if __name__ == "__main__":
    # --- test 1: f32, hidden-layer mask ('>='), small shapes -> fast path -------------
    batch, in_dim, out_dim, last_layer = 8, 16, 32, 0
    weights, bias, x, prev, k_mask = _make_case(1, batch, in_dim, out_dim, jnp.float32, in_dim)
    h_x, maxc = made_forward(x, weights, bias, prev, k_mask, last_layer)
    jax.block_until_ready((h_x, maxc))
    ref = _reference(x, weights, bias, prev, maxc, last_layer)
    assert h_x.shape == (batch, out_dim)
    assert jnp.allclose(h_x, ref, atol=1e-5, rtol=1e-5), "test1 f32 fast-path mismatch"

    # --- test 2: bf16 params, output-layer mask ('>'), non-128-multiple dims ----------
    # K=640 stays 640 (no 1024 padding), batch=192 stays a single 16-aligned tile.
    batch, in_dim, out_dim, last_layer = 192, 640, 96, 1
    weights, bias, x, prev, k_mask = _make_case(2, batch, in_dim, out_dim, jnp.bfloat16, 32)
    h_x, maxc = made_forward(x, weights, bias, prev, k_mask, last_layer)
    jax.block_until_ready((h_x, maxc))
    ref = _reference(x, weights, bias, prev, maxc, last_layer)
    assert h_x.shape == (batch, out_dim)
    assert jnp.allclose(h_x.astype(jnp.float32), ref, atol=0.5, rtol=0.05), \
        "test2 bf16 fast-path mismatch"

    # --- test 3: general tiled path with masked-W cache (num_m>1, num_n>1, num_k>1) ---
    batch, in_dim, out_dim, last_layer = 48, 256, 256, 0
    weights, bias, x, prev, k_mask = _make_case(3, batch, in_dim, out_dim, jnp.float32, 16)
    h_x, maxc = made_forward(x, weights, bias, prev, k_mask, last_layer,
                             tm_cap=16, tk_cap=128, tn_cap=128,
                             fast_path_budget_bytes=0)
    jax.block_until_ready((h_x, maxc))
    ref = _reference(x, weights, bias, prev, maxc, last_layer)
    assert h_x.shape == (batch, out_dim)
    assert jnp.allclose(h_x, ref, atol=1e-4, rtol=1e-5), "test3 tiled+cache mismatch"

    # --- test 4: general tiled path, num_n == 1 -> cache disabled, batch axis parallel -
    batch, in_dim, out_dim, last_layer = 48, 256, 128, 1
    weights, bias, x, prev, k_mask = _make_case(4, batch, in_dim, out_dim, jnp.float32, 16)
    h_x, maxc = made_forward(x, weights, bias, prev, k_mask, last_layer,
                             tm_cap=16, tk_cap=128, tn_cap=128,
                             fast_path_budget_bytes=0)
    jax.block_until_ready((h_x, maxc))
    ref = _reference(x, weights, bias, prev, maxc, last_layer)
    assert h_x.shape == (batch, out_dim)
    assert jnp.allclose(h_x, ref, atol=1e-4, rtol=1e-5), "test4 tiled no-cache mismatch"

    print("KERNEL_OK")
</pallas_src>

<mosaic_0001>
module attributes {stable_mosaic.version = 11 : i64} {
  func.func @_made_fast_kernel(%arg0: i32, %arg1: memref<8x128xf32, #tpu.memory_space<vmem>>, %arg2: memref<128x128xf32, #tpu.memory_space<vmem>>, %arg3: memref<1x128xf32, #tpu.memory_space<vmem>>, %arg4: memref<128x1xi32, #tpu.memory_space<vmem>>, %arg5: memref<1x128xi32, #tpu.memory_space<vmem>>, %arg6: memref<8x128xf32, #tpu.memory_space<vmem>>) attributes {dimension_semantics = [#tpu.dimension_semantics<parallel>], iteration_bounds = array<i64: 1>, scalar_prefetch = 0 : i64, scratch_operands = 0 : i64, tpu.core_type = #tpu.core_type<tc>, window_params = [{transform_indices = @transform_0, window_bounds = array<i64: 8, 128>}, {pipeline_mode = #tpu.pipeline_mode<synchronous>, transform_indices = @transform_1, window_bounds = array<i64: 128, 128>}, {pipeline_mode = #tpu.pipeline_mode<synchronous>, transform_indices = @transform_2, window_bounds = array<i64: 1, 128>}, {pipeline_mode = #tpu.pipeline_mode<synchronous>, transform_indices = @transform_3, window_bounds = array<i64: 128, 1>}, {pipeline_mode = #tpu.pipeline_mode<synchronous>, transform_indices = @transform_4, window_bounds = array<i64: 1, 128>}, {transform_indices = @transform_5, window_bounds = array<i64: 8, 128>}]} {
    %c0 = arith.constant 0 : index
    %c0_0 = arith.constant 0 : index
    %0 = vector.load %arg4[%c0, %c0_0] : memref<128x1xi32, #tpu.memory_space<vmem>>, vector<128x1xi32>
    %c0_1 = arith.constant 0 : index
    %c0_2 = arith.constant 0 : index
    %1 = vector.load %arg5[%c0_1, %c0_2] : memref<1x128xi32, #tpu.memory_space<vmem>>, vector<1x128xi32>
    %2 = vector.broadcast %1 : vector<1x128xi32> to vector<128x128xi32>
    %3 = vector.broadcast %0 : vector<128x1xi32> to vector<128x128xi32>
    %4 = arith.cmpi sge, %2, %3 : vector<128x128xi32>
    %c0_3 = arith.constant 0 : index
    %c0_4 = arith.constant 0 : index
    %5 = vector.load %arg2[%c0_3, %c0_4] : memref<128x128xf32, #tpu.memory_space<vmem>>, vector<128x128xf32>
    %cst = arith.constant 0.000000e+00 : f32
    %6 = vector.broadcast %cst : f32 to vector<128x128xf32>
    %7 = arith.select %4, %5, %6 : vector<128x128xi1>, vector<128x128xf32>
    %c0_5 = arith.constant 0 : index
    %c0_6 = arith.constant 0 : index
    %8 = vector.load %arg1[%c0_5, %c0_6] : memref<8x128xf32, #tpu.memory_space<vmem>>, vector<8x128xf32>
    %cst_7 = arith.constant dense<0.000000e+00> : vector<8x128xf32>
    %9 = tpu.matmul %8, %7, %cst_7 {dimension_numbers = #tpu.dot_dimension_numbers<[1], [0], [0], [1], [0, 0, 1, 1], [], []>} : vector<8x128xf32>, vector<128x128xf32>, vector<8x128xf32> -> vector<8x128xf32>
    %c0_8 = arith.constant 0 : index
    %c0_9 = arith.constant 0 : index
    %10 = vector.load %arg3[%c0_8, %c0_9] : memref<1x128xf32, #tpu.memory_space<vmem>>, vector<1x128xf32>
    %11 = vector.broadcast %10 : vector<1x128xf32> to vector<8x128xf32>
    %12 = arith.addf %9, %11 : vector<8x128xf32>
    %c0_10 = arith.constant 0 : index
    %c0_11 = arith.constant 0 : index
    %13 = vector.load %arg6[%c0_10, %c0_11] : memref<8x128xf32, #tpu.memory_space<vmem>>, vector<8x128xf32>
    tpu.vector_store %arg6[%c0_10, %c0_11], %12 {strides = array<i32>} : memref<8x128xf32, #tpu.memory_space<vmem>>, vector<8x128xf32>,
    return
  }
  func.func @transform_0(%arg0: i32) -> (i32, i32) {
    %c0_i32 = arith.constant 0 : i32
    %c0_i32_0 = arith.constant 0 : i32
    return %arg0, %c0_i32 : i32, i32
  }
  func.func @transform_1(%arg0: i32) -> (i32, i32) {
    %c0_i32 = arith.constant 0 : i32
    %c0_i32_0 = arith.constant 0 : i32
    %c0_i32_1 = arith.constant 0 : i32
    return %c0_i32, %c0_i32_0 : i32, i32
  }
  func.func @transform_2(%arg0: i32) -> (i32, i32) {
    %c0_i32 = arith.constant 0 : i32
    %c0_i32_0 = arith.constant 0 : i32
    %c0_i32_1 = arith.constant 0 : i32
    return %c0_i32, %c0_i32_0 : i32, i32
  }
  func.func @transform_3(%arg0: i32) -> (i32, i32) {
    %c0_i32 = arith.constant 0 : i32
    %c0_i32_0 = arith.constant 0 : i32
    %c0_i32_1 = arith.constant 0 : i32
    return %c0_i32, %c0_i32_0 : i32, i32
  }
  func.func @transform_4(%arg0: i32) -> (i32, i32) {
    %c0_i32 = arith.constant 0 : i32
    %c0_i32_0 = arith.constant 0 : i32
    %c0_i32_1 = arith.constant 0 : i32
    return %c0_i32, %c0_i32_0 : i32, i32
  }
  func.func @transform_5(%arg0: i32) -> (i32, i32) {
    %c0_i32 = arith.constant 0 : i32
    %c0_i32_0 = arith.constant 0 : i32
    return %arg0, %c0_i32 : i32, i32
  }
}

</mosaic_0001>

<bundles_post_ra>
// kernel: tpu_custom_call.1
= control target key start
LH: loop header
LB: loop body
LE: loop exit
PB: predicated region body
PF: predicated region fallthrough
CT: control target
= control target key end

     0   :  { %10 = vsyncpa [#allocation3], 0  ;;  %s590_s0 = inlined_call_operand.hbm [shape: f32[8,128], index: 0, kind: input, shape index: {}]   ;;  %s591_s1 = inlined_call_operand.vmem [shape: f32[128,128], index: 1, kind: input, shape index: {}]   ;;  %s592_s2 = inlined_call_operand.vmem [shape: f32[1,128], index: 2, kind: input, shape index: {}]   ;;  %s593_s3 = inlined_call_operand.vmem [shape: s32[128,1], index: 3, kind: input, shape index: {}]   ;;  %s594_s4 = inlined_call_operand.vmem [shape: s32[1,128], index: 4, kind: input, shape index: {}]   ;;  %s595_s5 = inlined_call_operand.hbm [shape: f32[8,128], index: 5, kind: output, shape index: {}]  }
   0x1   :  { %11 = vsyncpa [#allocation4], 0  ;;  %s402_s18 = smov [#allocation2]   ;;  %s354_s22 = scalar_lea.hbm %s590_s0, 128 }
   0x2   :  { %s18_s19 = sshll.u32 %s402_s18, 4  ;;  %p355_p0 = scmp.ne.s32.totalorder %s590_s0, %s354_s22  ;;  %s19_s19 = int_to_ptr.vmem [resolvable:$true] %s18_s19 }
   0x3   :  { %p358_p1 = scmp.lt.u32.totalorder %s354_s22, %s590_s0 }
   0x5   :  { %p360_p2 = pnand %p358_p1, %p355_p0 }
   0x7   :  { %363 = shalt.err (!%p360_p2)
}
   0x8   :  { %s364_s27 = scalar_lea.vmem %s19_s19, 128  ;;  %p369_p4 = scmp.lt.s32.totalorder %s19_s19, %s19_s19 }
   0x9   :  { %p365_p3 = scmp.ne.s32.totalorder %s19_s19, %s364_s27  ;;  %p370_p5 = scmp.lt.s32.totalorder %s364_s27, %s364_s27 }
   0xb   :  { %p371_p6 = por %p370_p5, %p369_p4 }
   0xd   :  { %p372_p7 = pnand %p371_p6, %p365_p3 }
   0xf   :  { %375 = shalt.err (!%p372_p7)
}
  0x10   :  { %21 = dma.hbm_to_vmem [thread:$0]  %s590_s0, 128, %s19_s19, [#allocation3]  }
  0x11   :  { %398 = dma.done.wait [#allocation3], 128  }
  0x12   :  { %399 = vsyncadd [#allocation3], 4294967168  ;;  %v403_v0 = vmov 0   ;;  %v35_v1 = vld [vmem:[%s593_s3 + $0x10] sm:$0xff]  ;;  %v33_v2 = vld [vmem:[%s593_s3] sm:$0xff]  ;;  %v404_v7 = vmov 0.0|0.0  }
  0x13   :  { %353 = vset.pattern.permute.xlu1 %v403_v0  ;;  %352 = vset.pattern.permute.xlu0 %v403_v0  ;;  %v36_v3 = vld [vmem:[%s593_s3 + $0x18] sm:$0xff]  ;;  %v34_v4 = vld [vmem:[%s593_s3 + $0x8] sm:$0xff]  ;;  %v37_v6 = vld [vmem:[%s593_s3 + $0x20] sm:$0xff]  ;;  %vm405_vm0 = vmmov 0   ;;  %v406_v18 = vmov 0.0   ;;  %s407_s17 = smov [#allocation5]  }
  0x14   :  { %61 = vperm.xlu1 %353, %v35_v1   ;;  %55 = vperm.xlu0 %352, %v33_v2   ;;  %v38_v5 = vld [vmem:[%s593_s3 + $0x28] sm:$0xff]  ;;  %v40_v8 = vld [vmem:[%s593_s3 + $0x38] sm:$0xff]  ;;  %v39_v9 = vld [vmem:[%s593_s3 + $0x30] sm:$0xff]  ;;  %s235_s18 = sshll.u32 %s407_s17, 4  ;;  %s236_s18 = int_to_ptr.vmem [resolvable:$true] %s235_s18 }
  0x15   :  { %314 = vmatprep.subr.bf16.mxu0 %v404_v7  ;;  %v42_v10 = vld [vmem:[%s593_s3 + $0x48] sm:$0xff]  ;;  %v41_v11 = vld [vmem:[%s593_s3 + $0x40] sm:$0xff]  ;;  %v44_v12 = vld [vmem:[%s593_s3 + $0x58] sm:$0xff]  ;;  %311 = vmatprep.mubr.msk.f32.mxu0 %vm405_vm0, %v406_v18  ;;  %p381_p9 = scmp.lt.s32.totalorder %s236_s18, %s236_s18 }
  0x16   :  { %v43_v13 = vld [vmem:[%s593_s3 + $0x50] sm:$0xff]  ;;  %v46_v14 = vld [vmem:[%s593_s3 + $0x68] sm:$0xff]  ;;  %v45_v15 = vld [vmem:[%s593_s3 + $0x60] sm:$0xff] }
  0x17   :  { %v48_v16 = vld [vmem:[%s593_s3 + $0x78] sm:$0xff]  ;;  %v47_v17 = vld [vmem:[%s593_s3 + $0x70] sm:$0xff]  ;;  %v118_v21 = vld [vmem:[%s591_s1] sm:$0xff] }
  0x18   :  { %64 = vperm.xlu1 %353, %v36_v3   ;;  %58 = vperm.xlu0 %352, %v34_v4   ;;  %v119_v22 = vld [vmem:[%s591_s1 + $0x8] sm:$0xff]  ;;  %v508_v23 = vld [vmem:[%s594_s4] ss:$0 sm:$0xff]  ;;  %v120_v27 = vld [vmem:[%s591_s1 + $0x10] sm:$0xff] }
  0x19   :  { %v315_v26 = vpack.c.bf16 %v119_v22, %v118_v21  ;;  %v121_v28 = vld [vmem:[%s591_s1 + $0x18] sm:$0xff]  ;;  %v122_v32 = vld [vmem:[%s591_s1 + $0x20] sm:$0xff]  ;;  %v123_v33 = vld [vmem:[%s591_s1 + $0x28] sm:$0xff] }
  0x1a   :  { %v319_v31 = vpack.c.bf16 %v121_v28, %v120_v27  ;;  %v323_v36 = vpack.c.bf16 %v123_v33, %v122_v32  ;;  %v124_v37 = vld [vmem:[%s591_s1 + $0x30] sm:$0xff]  ;;  %v125_v38 = vld [vmem:[%s591_s1 + $0x38] sm:$0xff]  ;;  %v126_v42 = vld [vmem:[%s591_s1 + $0x40] sm:$0xff] }
  0x1b   :  { %v327_v41 = vpack.c.bf16 %v125_v38, %v124_v37  ;;  %v127_v43 = vld [vmem:[%s591_s1 + $0x48] sm:$0xff]  ;;  %v128_v47 = vld [vmem:[%s591_s1 + $0x50] sm:$0xff]  ;;  %v129_v48 = vld [vmem:[%s591_s1 + $0x58] sm:$0xff] }
  0x1c   :  { %70 = vperm.xlu1 %353, %v38_v5   ;;  %67 = vperm.xlu0 %352, %v37_v6   ;;  %v331_v46 = vpack.c.bf16 %v127_v43, %v126_v42  ;;  %v335_v51 = vpack.c.bf16 %v129_v48, %v128_v47  ;;  %v130_v52 = vld [vmem:[%s591_s1 + $0x60] sm:$0xff]  ;;  %v131_v53 = vld [vmem:[%s591_s1 + $0x68] sm:$0xff]  ;;  %v132_v57 = vld [vmem:[%s591_s1 + $0x70] sm:$0xff] }
  0x1d   :  { %v339_v54 = vpack.c.bf16 %v131_v53, %v130_v52  ;;  %v133_v58 = vld [vmem:[%s591_s1 + $0x78] sm:$0xff]  ;;  %v150_v60 = vld [vmem:[#allocation2] sm:$0xff]  ;;  %s376_s1 = scalar_lea.vmem %s236_s18, 128 }
  0x1e   :  { %v343_v59 = vpack.c.bf16 %v133_v58, %v132_v57  ;;  %v245_v61 = vld [vmem:[%s592_s2] ss:$0 sm:$0xff]  ;;  %p377_p8 = scmp.ne.s32.totalorder %s236_s18, %s376_s1  ;;  %p382_p10 = scmp.lt.s32.totalorder %s376_s1, %s376_s1 }
  0x20   :  { %76 = vperm.xlu1 %353, %v40_v8   ;;  %73 = vperm.xlu0 %352, %v39_v9   ;;  %p383_p11 = por %p382_p10, %p381_p9 }
  0x22   :  { %p384_p12 = pnand %p383_p11, %p377_p8 }
  0x24   :  { %82 = vperm.xlu1 %353, %v42_v10   ;;  %79 = vperm.xlu0 %352, %v41_v11  }
  0x28   :  { %88 = vperm.xlu1 %353, %v44_v12   ;;  %85 = vperm.xlu0 %352, %v43_v13  }
  0x2c   :  { %94 = vperm.xlu1 %353, %v46_v14   ;;  %91 = vperm.xlu0 %352, %v45_v15  }
  0x30   :  { %100 = vperm.xlu1 %353, %v48_v16   ;;  %97 = vperm.xlu0 %352, %v47_v17  }
  0x93   :  { %v62_v19 = vpop.permute.xlu1 %61  ;;  %v56_v20 = vpop.permute.xlu0 %55 }
  0x94   :  { %vm102_vm2 = vcmp.ge.s32.totalorder %v508_v23, %v56_v20  ;;  %vm104_vm4 = vcmp.ge.s32.totalorder %v508_v23, %v62_v19 }
  0x97   :  { %v65_v24 = vpop.permute.xlu1 %64  ;;  %v59_v25 = vpop.permute.xlu0 %58 }
  0x98   :  { %vm103_vm1 = vcmp.ge.s32.totalorder %v508_v23, %v59_v25  ;;  %vm105_vm5 = vcmp.ge.s32.totalorder %v508_v23, %v65_v24 }
  0x99   :  { %vm316_vm3 = vmpackc.low %vm103_vm1, %vm102_vm2 }
  0x9a   :  { %317 = vmatpush3.bf16.msk.msra.mxu0 %vm316_vm3, %v315_v26  ;;  %vm320_vm6 = vmpackc.low %vm105_vm5, %vm104_vm4 }
  0x9b   :  { %v71_v29 = vpop.permute.xlu1 %70  ;;  %v68_v30 = vpop.permute.xlu0 %67  ;;  %318 = vmatprep.subr.bf16.mxu0 %v404_v7 }
  0x9c   :  { %vm107_vm7 = vcmp.ge.s32.totalorder %v508_v23, %v71_v29  ;;  %vm106_vm8 = vcmp.ge.s32.totalorder %v508_v23, %v68_v30 }
  0x9d   :  { %vm324_vm9 = vmpackc.low %vm107_vm7, %vm106_vm8 }
  0x9e   :  { %321 = vmatpush3.bf16.msk.msra.mxu0 %vm320_vm6, %v319_v31 }
  0x9f   :  { %v77_v34 = vpop.permute.xlu1 %76  ;;  %v74_v35 = vpop.permute.xlu0 %73  ;;  %322 = vmatprep.subr.bf16.mxu0 %v404_v7 }
  0xa0   :  { %vm109_vm10 = vcmp.ge.s32.totalorder %v508_v23, %v77_v34  ;;  %vm108_vm11 = vcmp.ge.s32.totalorder %v508_v23, %v74_v35 }
  0xa1   :  { %vm328_vm12 = vmpackc.low %vm109_vm10, %vm108_vm11 }
  0xa2   :  { %325 = vmatpush3.bf16.msk.msra.mxu0 %vm324_vm9, %v323_v36 }
  0xa3   :  { %v83_v39 = vpop.permute.xlu1 %82  ;;  %v80_v40 = vpop.permute.xlu0 %79  ;;  %326 = vmatprep.subr.bf16.mxu0 %v404_v7 }
  0xa4   :  { %vm111_vm13 = vcmp.ge.s32.totalorder %v508_v23, %v83_v39  ;;  %vm110_vm14 = vcmp.ge.s32.totalorder %v508_v23, %v80_v40 }
  0xa5   :  { %vm332_vm15 = vmpackc.low %vm111_vm13, %vm110_vm14 }
  0xa6   :  { %329 = vmatpush3.bf16.msk.msra.mxu0 %vm328_vm12, %v327_v41 }
  0xa7   :  { %v89_v44 = vpop.permute.xlu1 %88  ;;  %v86_v45 = vpop.permute.xlu0 %85  ;;  %330 = vmatprep.subr.bf16.mxu0 %v404_v7 }
  0xa8   :  { %vm113_vm0 = vcmp.ge.s32.totalorder %v508_v23, %v89_v44  ;;  %vm112_vm1 = vcmp.ge.s32.totalorder %v508_v23, %v86_v45 }
  0xa9   :  { %vm336_vm2 = vmpackc.low %vm113_vm0, %vm112_vm1 }
  0xaa   :  { %333 = vmatpush3.bf16.msk.msra.mxu0 %vm332_vm15, %v331_v46 }
  0xab   :  { %v95_v49 = vpop.permute.xlu1 %94  ;;  %v92_v50 = vpop.permute.xlu0 %91  ;;  %334 = vmatprep.subr.bf16.mxu0 %v404_v7 }
  0xac   :  { %vm115_vm3 = vcmp.ge.s32.totalorder %v508_v23, %v95_v49  ;;  %vm114_vm4 = vcmp.ge.s32.totalorder %v508_v23, %v92_v50 }
  0xad   :  { %vm340_vm5 = vmpackc.low %vm115_vm3, %vm114_vm4 }
  0xae   :  { %337 = vmatpush3.bf16.msk.msra.mxu0 %vm336_vm2, %v335_v51 }
  0xaf   :  { %v101_v55 = vpop.permute.xlu1 %100  ;;  %v98_v56 = vpop.permute.xlu0 %97  ;;  %338 = vmatprep.subr.bf16.mxu0 %v404_v7 }
  0xb0   :  { %vm117_vm6 = vcmp.ge.s32.totalorder %v508_v23, %v101_v55  ;;  %vm116_vm7 = vcmp.ge.s32.totalorder %v508_v23, %v98_v56 }
  0xb1   :  { %vm344_vm8 = vmpackc.low %vm117_vm6, %vm116_vm7 }
  0xb2   :  { %341 = vmatpush3.bf16.msk.msra.mxu0 %vm340_vm5, %v339_v54 }
  0xb3   :  { %342 = vmatprep.subr.bf16.mxu0 %v404_v7 }
  0xb6   :  { %345 = vmatpush3.bf16.msk.msra.mxu0 %vm344_vm8, %v343_v59 }
  0xb9   :  { %312 = vmatmul.mubr.f32.vlgmr.msra.gmra.mrb[0].mxu0 %v150_v60 }
 0x18c   :  { %v224_v62 = vpop.f32.mrb[0].mxu0 }
 0x18d   :  { %v225_v63 = vadd.f32 %v245_v61, %v224_v62  ;;  %v313_v0 = vpop.f32.mrb[1].mxu0 }
 0x18f   :  { %228 = vst [vmem:[#allocation5] sm:$0xff] %v225_v63 }
 0x190   :  { %387 = shalt.err (!%p384_p12)
}
 0x191   :  { %s388_s20 = scalar_lea.hbm %s595_s5, 128 }
 0x192   :  { %p389_p13 = scmp.ne.s32.totalorder %s595_s5, %s388_s20  ;;  %p392_p0 = scmp.lt.u32.totalorder %s388_s20, %s595_s5 }
 0x194   :  { %p394_p1 = pnand %p392_p0, %p389_p13 }
 0x196   :  { %397 = shalt.err (!%p394_p1)
}
 0x197   :  { %238 = dma.vmem_to_hbm [thread:$0]  %s236_s18, 128, %s595_s5, [#allocation4]  }
 0x198   :  { %400 = dma.done.wait [#allocation4], 128  }
 0x199   :  { %401 = vsyncadd [#allocation4], 4294967168 }
 0x19a   :  { %242 = vsyncpa [#allocation3], 1 }
 0x19b   :  { %243 = vsyncpa [#allocation4], 1 }

</bundles_post_ra>
